<compile_context>
chip_gen: v7x
topology: tpu7x:2x2x1
jax: 0.10.0
libtpu: 0.0.40
codegen_flags: <defaults>
</compile_context>

<pallas_src>
import functools

import jax
import jax.numpy as jnp
from jax import lax
from jax.experimental import pallas as pl
from jax.experimental.pallas import tpu as pltpu


def _vmem_limit_bytes():
    """Generation-aware VMEM budget with headroom for compiler scratch."""
    try:
        cap = int(pltpu.get_tpu_info().vmem_capacity_bytes)
    except Exception:  # conservative fallback if the query is unavailable
        cap = 64 << 20
    if cap >= (128 << 20):            # v5e / v6e: 128 MiB physical
        return 100 << 20
    return max(32 << 20, (cap * 5) // 8)   # v7x: 64 MiB physical -> ~40 MiB


def _pick_pixel_tile(hw, max_tile=2048):
    """Largest lane-dense (multiple-of-128) divisor of H*W up to max_tile."""
    if hw <= max_tile:
        return hw
    for t in range(max_tile - max_tile % 128, 127, -128):
        if hw % t == 0:
            return t
    return hw


# ---------------------------------------------------------------------------
# Pass 1: per-image 3x3 conv (9 shifted MXU matmuls, bf16 in / f32 acc)
#         + centered per-image BatchNorm partial statistics.
# ---------------------------------------------------------------------------
def _conv_stats_kernel(xf_ref, wt_ref, ml_ref, mr_ref, y_ref, sum_ref, m2_ref,
                       *, width, hw, inv_cnt):
    # xf_ref : (1, Cin, H*W + 2*W + 2) bf16  flattened, spatially padded image n
    # wt_ref : (9, Cout, Cin)          bf16  conv weight, tap-major (kh*3 + kw)
    # ml/mr  : (1, H*W)                f32   left / right image-edge column masks
    # y_ref  : (1, Cout, H*W)          bf16  conv output (channel-major, lane-dense)
    # sum/m2 : (1, Cout, 1)            f32   per-image BN partials (sum, centered M2)
    cout = y_ref.shape[1]
    acc = jnp.zeros((cout, hw), jnp.float32)
    for kw in range(3):
        part = jnp.zeros((cout, hw), jnp.float32)
        for kh in range(3):
            tap = kh * 3 + kw
            x_t = xf_ref[0, :, pl.ds(kh * width + kw, hw)]      # (Cin, H*W) bf16
            part = part + jnp.dot(wt_ref[tap], x_t,
                                  preferred_element_type=jnp.float32)
        if kw == 0:      # left neighbour wrapped from previous row -> zero at w == 0
            part = part * ml_ref[...]
        elif kw == 2:    # right neighbour wrapped from next row -> zero at w == W-1
            part = part * mr_ref[...]
        acc = acc + part

    # bf16 intermediate (halves y HBM traffic); stats come from the f32 accumulator.
    y_ref[0] = acc.astype(y_ref.dtype)

    s = jnp.sum(acc, axis=1, keepdims=True)        # (Cout, 1)
    d = acc - s * inv_cnt                          # centered -> stable variance
    sum_ref[0] = s
    m2_ref[0] = jnp.sum(d * d, axis=1, keepdims=True)


# ---------------------------------------------------------------------------
# Pass 2: fused BatchNorm (precomputed scale/shift) + LeakyReLU epilogue.
# All element-wise math in f32 (v5e has no bf16 VPU); cast only at the load.
# ---------------------------------------------------------------------------
def _bn_lrelu_kernel(y_ref, scale_ref, shift_ref, o_ref, *, slope):
    # y_ref: (1, Cout, TP) bf16 ; scale/shift: (Cout, 1) f32 ; o_ref: (1, Cout, TP) f32
    y = y_ref[0].astype(jnp.float32)
    y_bn = y * scale_ref[...] + shift_ref[...]
    o_ref[0] = jnp.where(y_bn >= 0, y_bn, slope * y_bn)


def conv_block_forward(x_nchw, weight_oihw, gamma, beta,
                       *, eps=1e-5, leakiness=0.2, compute_dtype=jnp.bfloat16):
    """conv_block forward (Conv2d 3x3/s1/p1, no bias -> BatchNorm2d batch-stats ->
    LeakyReLU). Input and output are NCHW float32, matching the PyTorch module."""
    n, cin, h, w = x_nchw.shape
    cout, cin_w, kh_, kw_ = weight_oihw.shape
    assert (cin_w, kh_, kw_) == (cin, 3, 3), "kernel implements the 3x3 / s1 / p1 case"
    hw = h * w
    flat_len = hw + 2 * w + 2

    # ---- staging (layout-preserving; no transpose, no im2col) -------------------
    # NCHW -> (N, Cin, H*W) is a free reshape; a single pad of (W+1) zeros per side
    # supplies both the top/bottom halo rows and the corner-tap slack.
    x_flat = x_nchw.reshape(n, cin, hw).astype(compute_dtype)
    xf = jnp.pad(x_flat, ((0, 0), (0, 0), (w + 1, w + 1)))          # (N, Cin, L)

    wt = jnp.transpose(weight_oihw, (2, 3, 0, 1)).reshape(9, cout, cin)
    wt = wt.astype(compute_dtype)                                   # (9, Cout, Cin)

    col = jnp.arange(hw, dtype=jnp.int32) % w
    m_left = jnp.where(col == 0, 0.0, 1.0).astype(jnp.float32).reshape(1, hw)
    m_right = jnp.where(col == w - 1, 0.0, 1.0).astype(jnp.float32).reshape(1, hw)

    vmem_limit = _vmem_limit_bytes()

    # ---- pass 1: per-image conv + centered BN partials ---------------------------
    # grid=(N,): one image per step; per-image partials keep both v7x TCs independent.
    cost1 = pl.CostEstimate(
        flops=2 * n * hw * 9 * cin * cout + 4 * n * hw * cout,
        transcendentals=0,
        bytes_accessed=(n * cin * flat_len * 2 + 9 * cout * cin * 2 + 2 * hw * 4
                        + n * cout * hw * 2 + 2 * n * cout * 4),
    )
    y, sums, m2s = pl.pallas_call(
        functools.partial(_conv_stats_kernel, width=w, hw=hw, inv_cnt=1.0 / hw),
        out_shape=(
            jax.ShapeDtypeStruct((n, cout, hw), compute_dtype),   # bf16 intermediate
            jax.ShapeDtypeStruct((n, cout, 1), jnp.float32),
            jax.ShapeDtypeStruct((n, cout, 1), jnp.float32),
        ),
        grid=(n,),
        in_specs=[
            pl.BlockSpec((1, cin, flat_len), lambda i: (i, 0, 0)),
            pl.BlockSpec((9, cout, cin), lambda i: (0, 0, 0)),
            pl.BlockSpec((1, hw), lambda i: (0, 0)),
            pl.BlockSpec((1, hw), lambda i: (0, 0)),
        ],
        out_specs=(
            pl.BlockSpec((1, cout, hw), lambda i: (i, 0, 0)),
            pl.BlockSpec((1, cout, 1), lambda i: (i, 0, 0)),
            pl.BlockSpec((1, cout, 1), lambda i: (i, 0, 0)),
        ),
        compiler_params=pltpu.CompilerParams(
            dimension_semantics=("parallel",),
            vmem_limit_bytes=vmem_limit,
        ),
        cost_estimate=cost1,
    )(xf, wt, m_left, m_right)

    # ---- tiny finalize: Chan/Welford combine of per-image (sum, M2) --------------
    cnt = jnp.float32(hw)
    total = jnp.float32(n * hw)
    sums = sums[..., 0]                            # (N, Cout)
    m2s = m2s[..., 0]
    mean_i = sums / cnt
    mean = jnp.sum(sums, axis=0) / total           # (Cout,)
    m2 = jnp.sum(m2s, axis=0) + cnt * jnp.sum((mean_i - mean[None, :]) ** 2, axis=0)
    var = m2 / total                               # biased var (BN training-mode norm)
    scale = gamma.astype(jnp.float32) * lax.rsqrt(var + eps)
    shift = beta.astype(jnp.float32) - mean * scale
    scale = scale.reshape(cout, 1)
    shift = shift.reshape(cout, 1)

    # ---- pass 2: fused BN + LeakyReLU, writes NCHW layout directly ---------------
    tp = _pick_pixel_tile(hw)                      # lane-dense pixel tile
    cost2 = pl.CostEstimate(
        flops=4 * n * cout * hw,
        transcendentals=0,
        bytes_accessed=n * cout * hw * (2 + 4) + 2 * cout * 4,
    )
    out_flat = pl.pallas_call(
        functools.partial(_bn_lrelu_kernel, slope=leakiness),
        out_shape=jax.ShapeDtypeStruct((n, cout, hw), jnp.float32),
        grid=(n, hw // tp),
        in_specs=[
            pl.BlockSpec((1, cout, tp), lambda i, j: (i, 0, j)),
            pl.BlockSpec((cout, 1), lambda i, j: (0, 0)),
            pl.BlockSpec((cout, 1), lambda i, j: (0, 0)),
        ],
        out_specs=pl.BlockSpec((1, cout, tp), lambda i, j: (i, 0, j)),
        compiler_params=pltpu.CompilerParams(
            dimension_semantics=("parallel", "parallel"),
            vmem_limit_bytes=vmem_limit,
        ),
        cost_estimate=cost2,
    )(y, scale, shift)

    # (N, Cout, H*W) -> (N, Cout, H, W) splits the trailing dim only: free, no copy.
    return out_flat.reshape(n, cout, h, w)


def _reference(x_nchw, weight_oihw, gamma, beta, *, eps=1e-5, leakiness=0.2,
               quantize_inputs=False):
    """Pure-JAX reference mirroring PyTorch Conv2d + BatchNorm2d(train) + LeakyReLU."""
    x = x_nchw
    w = weight_oihw
    if quantize_inputs:   # mirror the kernel's bf16 MXU operands (f32 accumulate)
        x = x.astype(jnp.bfloat16).astype(jnp.float32)
        w = w.astype(jnp.bfloat16).astype(jnp.float32)
    y = lax.conv_general_dilated(
        x, w, window_strides=(1, 1), padding=((1, 1), (1, 1)),
        dimension_numbers=("NCHW", "OIHW", "NCHW"),
        precision=lax.Precision.HIGHEST)
    mean = jnp.mean(y, axis=(0, 2, 3), keepdims=True)
    var = jnp.mean((y - mean) ** 2, axis=(0, 2, 3), keepdims=True)
    y_hat = (y - mean) * lax.rsqrt(var + eps)
    y_bn = y_hat * gamma.reshape(1, -1, 1, 1) + beta.reshape(1, -1, 1, 1)
    return jnp.where(y_bn >= 0, y_bn, leakiness * y_bn)


if __name__ == "__main__":
    key = jax.random.PRNGKey(0)
    k_x, k_w = jax.random.split(key)

    N, C_IN, C_OUT, H, W = 2, 4, 8, 16, 16

    x = jax.random.normal(k_x, (N, C_IN, H, W), dtype=jnp.float32)
    # Deterministic "Kaiming-ish" conv weight init; PyTorch shape (Cout, Cin, 3, 3).
    fan_in = C_IN * 3 * 3
    weight = jax.random.normal(k_w, (C_OUT, C_IN, 3, 3), dtype=jnp.float32) / jnp.sqrt(fan_in)
    # BatchNorm2d default affine init.
    gamma = jnp.ones((C_OUT,), dtype=jnp.float32)
    beta = jnp.zeros((C_OUT,), dtype=jnp.float32)

    out = conv_block_forward(x, weight, gamma, beta)
    out = jax.block_until_ready(out)
    assert out.shape == (N, C_OUT, H, W)

    # The kernel keeps the conv intermediate in bf16 (per review), so the check vs the
    # bf16-input-quantized reference carries a bf16-rounding-sized tolerance.
    ref_q = _reference(x, weight, gamma, beta, quantize_inputs=True)
    assert jnp.allclose(out, ref_q, atol=2.5e-2, rtol=2.5e-2), \
        "mismatch vs bf16-quantized reference"

    # Looser check vs the exact f32 PyTorch-equivalent forward; differences come only
    # from bf16 MXU operands + the bf16 intermediate (deliberate precision trade).
    ref = _reference(x, weight, gamma, beta, quantize_inputs=False)
    assert jnp.allclose(out, ref, atol=5e-2, rtol=5e-2), "mismatch vs f32 reference"

    print("KERNEL_OK")
</pallas_src>

<mosaic_0001>
module attributes {stable_mosaic.version = 11 : i64} {
  func.func @_conv_stats_kernel(%arg0: i32, %arg1: memref<1x4x290xbf16, #tpu.memory_space<vmem>>, %arg2: memref<9x8x4xbf16, #tpu.memory_space<vmem>>, %arg3: memref<1x256xf32, #tpu.memory_space<vmem>>, %arg4: memref<1x256xf32, #tpu.memory_space<vmem>>, %arg5: memref<1x8x256xbf16, #tpu.memory_space<vmem>>, %arg6: memref<1x8x1xf32, #tpu.memory_space<vmem>>, %arg7: memref<1x8x1xf32, #tpu.memory_space<vmem>>) attributes {dimension_semantics = [#tpu.dimension_semantics<parallel>], iteration_bounds = array<i64: 2>, scalar_prefetch = 0 : i64, scratch_operands = 0 : i64, tpu.core_type = #tpu.core_type<tc>, window_params = [{transform_indices = @transform_0, window_bounds = array<i64: 1, 4, 290>}, {pipeline_mode = #tpu.pipeline_mode<synchronous>, transform_indices = @transform_1, window_bounds = array<i64: 9, 8, 4>}, {pipeline_mode = #tpu.pipeline_mode<synchronous>, transform_indices = @transform_2, window_bounds = array<i64: 1, 256>}, {pipeline_mode = #tpu.pipeline_mode<synchronous>, transform_indices = @transform_3, window_bounds = array<i64: 1, 256>}, {transform_indices = @transform_4, window_bounds = array<i64: 1, 8, 256>}, {transform_indices = @transform_5, window_bounds = array<i64: 1, 8, 1>}, {transform_indices = @transform_6, window_bounds = array<i64: 1, 8, 1>}]} {
    %cst = arith.constant 0.000000e+00 : f32
    %0 = vector.broadcast %cst : f32 to vector<8x256xf32>
    %cst_0 = arith.constant 0.000000e+00 : f32
    %1 = vector.broadcast %cst_0 : f32 to vector<8x256xf32>
    %c0 = arith.constant 0 : index
    %c0_1 = arith.constant 0 : index
    %c0_2 = arith.constant 0 : index
    %2 = vector.load %arg1[%c0, %c0_1, %c0_2] : memref<1x4x290xbf16, #tpu.memory_space<vmem>>, vector<1x4x256xbf16>
    %3 = vector.shape_cast %2 : vector<1x4x256xbf16> to vector<4x256xbf16>
    %c0_3 = arith.constant 0 : index
    %c0_4 = arith.constant 0 : index
    %c0_5 = arith.constant 0 : index
    %4 = vector.load %arg2[%c0_3, %c0_4, %c0_5] : memref<9x8x4xbf16, #tpu.memory_space<vmem>>, vector<1x8x4xbf16>
    %5 = vector.shape_cast %4 : vector<1x8x4xbf16> to vector<8x4xbf16>
    %cst_6 = arith.constant dense<0.000000e+00> : vector<8x256xf32>
    %6 = tpu.matmul %5, %3, %cst_6 {dimension_numbers = #tpu.dot_dimension_numbers<[1], [0], [0], [1], [0, 0, 1, 1], [], []>} : vector<8x4xbf16>, vector<4x256xbf16>, vector<8x256xf32> -> vector<8x256xf32>
    %7 = arith.addf %1, %6 : vector<8x256xf32>
    %c0_7 = arith.constant 0 : index
    %c0_8 = arith.constant 0 : index
    %c16 = arith.constant 16 : index
    %8 = vector.load %arg1[%c0_7, %c0_8, %c16] : memref<1x4x290xbf16, #tpu.memory_space<vmem>>, vector<1x4x256xbf16>
    %9 = vector.shape_cast %8 : vector<1x4x256xbf16> to vector<4x256xbf16>
    %c3 = arith.constant 3 : index
    %c0_9 = arith.constant 0 : index
    %c0_10 = arith.constant 0 : index
    %10 = vector.load %arg2[%c3, %c0_9, %c0_10] : memref<9x8x4xbf16, #tpu.memory_space<vmem>>, vector<1x8x4xbf16>
    %11 = vector.shape_cast %10 : vector<1x8x4xbf16> to vector<8x4xbf16>
    %cst_11 = arith.constant dense<0.000000e+00> : vector<8x256xf32>
    %12 = tpu.matmul %11, %9, %cst_11 {dimension_numbers = #tpu.dot_dimension_numbers<[1], [0], [0], [1], [0, 0, 1, 1], [], []>} : vector<8x4xbf16>, vector<4x256xbf16>, vector<8x256xf32> -> vector<8x256xf32>
    %13 = arith.addf %7, %12 : vector<8x256xf32>
    %c0_12 = arith.constant 0 : index
    %c0_13 = arith.constant 0 : index
    %c32 = arith.constant 32 : index
    %14 = vector.load %arg1[%c0_12, %c0_13, %c32] : memref<1x4x290xbf16, #tpu.memory_space<vmem>>, vector<1x4x256xbf16>
    %15 = vector.shape_cast %14 : vector<1x4x256xbf16> to vector<4x256xbf16>
    %c6 = arith.constant 6 : index
    %c0_14 = arith.constant 0 : index
    %c0_15 = arith.constant 0 : index
    %16 = vector.load %arg2[%c6, %c0_14, %c0_15] : memref<9x8x4xbf16, #tpu.memory_space<vmem>>, vector<1x8x4xbf16>
    %17 = vector.shape_cast %16 : vector<1x8x4xbf16> to vector<8x4xbf16>
    %cst_16 = arith.constant dense<0.000000e+00> : vector<8x256xf32>
    %18 = tpu.matmul %17, %15, %cst_16 {dimension_numbers = #tpu.dot_dimension_numbers<[1], [0], [0], [1], [0, 0, 1, 1], [], []>} : vector<8x4xbf16>, vector<4x256xbf16>, vector<8x256xf32> -> vector<8x256xf32>
    %19 = arith.addf %13, %18 : vector<8x256xf32>
    %c0_17 = arith.constant 0 : index
    %c0_18 = arith.constant 0 : index
    %20 = vector.load %arg3[%c0_17, %c0_18] : memref<1x256xf32, #tpu.memory_space<vmem>>, vector<1x256xf32>
    %21 = vector.broadcast %20 : vector<1x256xf32> to vector<8x256xf32>
    %22 = arith.mulf %19, %21 : vector<8x256xf32>
    %23 = arith.addf %0, %22 : vector<8x256xf32>
    %cst_19 = arith.constant 0.000000e+00 : f32
    %24 = vector.broadcast %cst_19 : f32 to vector<8x256xf32>
    %c0_20 = arith.constant 0 : index
    %c0_21 = arith.constant 0 : index
    %c1 = arith.constant 1 : index
    %25 = vector.load %arg1[%c0_20, %c0_21, %c1] : memref<1x4x290xbf16, #tpu.memory_space<vmem>>, vector<1x4x256xbf16>
    %26 = vector.shape_cast %25 : vector<1x4x256xbf16> to vector<4x256xbf16>
    %c1_22 = arith.constant 1 : index
    %c0_23 = arith.constant 0 : index
    %c0_24 = arith.constant 0 : index
    %27 = vector.load %arg2[%c1_22, %c0_23, %c0_24] : memref<9x8x4xbf16, #tpu.memory_space<vmem>>, vector<1x8x4xbf16>
    %28 = vector.shape_cast %27 : vector<1x8x4xbf16> to vector<8x4xbf16>
    %cst_25 = arith.constant dense<0.000000e+00> : vector<8x256xf32>
    %29 = tpu.matmul %28, %26, %cst_25 {dimension_numbers = #tpu.dot_dimension_numbers<[1], [0], [0], [1], [0, 0, 1, 1], [], []>} : vector<8x4xbf16>, vector<4x256xbf16>, vector<8x256xf32> -> vector<8x256xf32>
    %30 = arith.addf %24, %29 : vector<8x256xf32>
    %c0_26 = arith.constant 0 : index
    %c0_27 = arith.constant 0 : index
    %c17 = arith.constant 17 : index
    %31 = vector.load %arg1[%c0_26, %c0_27, %c17] : memref<1x4x290xbf16, #tpu.memory_space<vmem>>, vector<1x4x256xbf16>
    %32 = vector.shape_cast %31 : vector<1x4x256xbf16> to vector<4x256xbf16>
    %c4 = arith.constant 4 : index
    %c0_28 = arith.constant 0 : index
    %c0_29 = arith.constant 0 : index
    %33 = vector.load %arg2[%c4, %c0_28, %c0_29] : memref<9x8x4xbf16, #tpu.memory_space<vmem>>, vector<1x8x4xbf16>
    %34 = vector.shape_cast %33 : vector<1x8x4xbf16> to vector<8x4xbf16>
    %cst_30 = arith.constant dense<0.000000e+00> : vector<8x256xf32>
    %35 = tpu.matmul %34, %32, %cst_30 {dimension_numbers = #tpu.dot_dimension_numbers<[1], [0], [0], [1], [0, 0, 1, 1], [], []>} : vector<8x4xbf16>, vector<4x256xbf16>, vector<8x256xf32> -> vector<8x256xf32>
    %36 = arith.addf %30, %35 : vector<8x256xf32>
    %c0_31 = arith.constant 0 : index
    %c0_32 = arith.constant 0 : index
    %c33 = arith.constant 33 : index
    %37 = vector.load %arg1[%c0_31, %c0_32, %c33] : memref<1x4x290xbf16, #tpu.memory_space<vmem>>, vector<1x4x256xbf16>
    %38 = vector.shape_cast %37 : vector<1x4x256xbf16> to vector<4x256xbf16>
    %c7 = arith.constant 7 : index
    %c0_33 = arith.constant 0 : index
    %c0_34 = arith.constant 0 : index
    %39 = vector.load %arg2[%c7, %c0_33, %c0_34] : memref<9x8x4xbf16, #tpu.memory_space<vmem>>, vector<1x8x4xbf16>
    %40 = vector.shape_cast %39 : vector<1x8x4xbf16> to vector<8x4xbf16>
    %cst_35 = arith.constant dense<0.000000e+00> : vector<8x256xf32>
    %41 = tpu.matmul %40, %38, %cst_35 {dimension_numbers = #tpu.dot_dimension_numbers<[1], [0], [0], [1], [0, 0, 1, 1], [], []>} : vector<8x4xbf16>, vector<4x256xbf16>, vector<8x256xf32> -> vector<8x256xf32>
    %42 = arith.addf %36, %41 : vector<8x256xf32>
    %43 = arith.addf %23, %42 : vector<8x256xf32>
    %cst_36 = arith.constant 0.000000e+00 : f32
    %44 = vector.broadcast %cst_36 : f32 to vector<8x256xf32>
    %c0_37 = arith.constant 0 : index
    %c0_38 = arith.constant 0 : index
    %c2 = arith.constant 2 : index
    %45 = vector.load %arg1[%c0_37, %c0_38, %c2] : memref<1x4x290xbf16, #tpu.memory_space<vmem>>, vector<1x4x256xbf16>
    %46 = vector.shape_cast %45 : vector<1x4x256xbf16> to vector<4x256xbf16>
    %c2_39 = arith.constant 2 : index
    %c0_40 = arith.constant 0 : index
    %c0_41 = arith.constant 0 : index
    %47 = vector.load %arg2[%c2_39, %c0_40, %c0_41] : memref<9x8x4xbf16, #tpu.memory_space<vmem>>, vector<1x8x4xbf16>
    %48 = vector.shape_cast %47 : vector<1x8x4xbf16> to vector<8x4xbf16>
    %cst_42 = arith.constant dense<0.000000e+00> : vector<8x256xf32>
    %49 = tpu.matmul %48, %46, %cst_42 {dimension_numbers = #tpu.dot_dimension_numbers<[1], [0], [0], [1], [0, 0, 1, 1], [], []>} : vector<8x4xbf16>, vector<4x256xbf16>, vector<8x256xf32> -> vector<8x256xf32>
    %50 = arith.addf %44, %49 : vector<8x256xf32>
    %c0_43 = arith.constant 0 : index
    %c0_44 = arith.constant 0 : index
    %c18 = arith.constant 18 : index
    %51 = vector.load %arg1[%c0_43, %c0_44, %c18] : memref<1x4x290xbf16, #tpu.memory_space<vmem>>, vector<1x4x256xbf16>
    %52 = vector.shape_cast %51 : vector<1x4x256xbf16> to vector<4x256xbf16>
    %c5 = arith.constant 5 : index
    %c0_45 = arith.constant 0 : index
    %c0_46 = arith.constant 0 : index
    %53 = vector.load %arg2[%c5, %c0_45, %c0_46] : memref<9x8x4xbf16, #tpu.memory_space<vmem>>, vector<1x8x4xbf16>
    %54 = vector.shape_cast %53 : vector<1x8x4xbf16> to vector<8x4xbf16>
    %cst_47 = arith.constant dense<0.000000e+00> : vector<8x256xf32>
    %55 = tpu.matmul %54, %52, %cst_47 {dimension_numbers = #tpu.dot_dimension_numbers<[1], [0], [0], [1], [0, 0, 1, 1], [], []>} : vector<8x4xbf16>, vector<4x256xbf16>, vector<8x256xf32> -> vector<8x256xf32>
    %56 = arith.addf %50, %55 : vector<8x256xf32>
    %c0_48 = arith.constant 0 : index
    %c0_49 = arith.constant 0 : index
    %c34 = arith.constant 34 : index
    %57 = vector.load %arg1[%c0_48, %c0_49, %c34] : memref<1x4x290xbf16, #tpu.memory_space<vmem>>, vector<1x4x256xbf16>
    %58 = vector.shape_cast %57 : vector<1x4x256xbf16> to vector<4x256xbf16>
    %c8 = arith.constant 8 : index
    %c0_50 = arith.constant 0 : index
    %c0_51 = arith.constant 0 : index
    %59 = vector.load %arg2[%c8, %c0_50, %c0_51] : memref<9x8x4xbf16, #tpu.memory_space<vmem>>, vector<1x8x4xbf16>
    %60 = vector.shape_cast %59 : vector<1x8x4xbf16> to vector<8x4xbf16>
    %cst_52 = arith.constant dense<0.000000e+00> : vector<8x256xf32>
    %61 = tpu.matmul %60, %58, %cst_52 {dimension_numbers = #tpu.dot_dimension_numbers<[1], [0], [0], [1], [0, 0, 1, 1], [], []>} : vector<8x4xbf16>, vector<4x256xbf16>, vector<8x256xf32> -> vector<8x256xf32>
    %62 = arith.addf %56, %61 : vector<8x256xf32>
    %c0_53 = arith.constant 0 : index
    %c0_54 = arith.constant 0 : index
    %63 = vector.load %arg4[%c0_53, %c0_54] : memref<1x256xf32, #tpu.memory_space<vmem>>, vector<1x256xf32>
    %64 = vector.broadcast %63 : vector<1x256xf32> to vector<8x256xf32>
    %65 = arith.mulf %62, %64 : vector<8x256xf32>
    %66 = arith.addf %43, %65 : vector<8x256xf32>
    %67 = arith.truncf %66 : vector<8x256xf32> to vector<8x256xbf16>
    %c0_55 = arith.constant 0 : index
    %c0_56 = arith.constant 0 : index
    %c0_57 = arith.constant 0 : index
    %68 = vector.load %arg5[%c0_55, %c0_56, %c0_57] : memref<1x8x256xbf16, #tpu.memory_space<vmem>>, vector<1x8x256xbf16>
    %69 = vector.shape_cast %68 : vector<1x8x256xbf16> to vector<8x256xbf16>
    %70 = vector.shape_cast %67 : vector<8x256xbf16> to vector<1x8x256xbf16>
    tpu.vector_store %arg5[%c0_55, %c0_56, %c0_57], %70 {strides = array<i32>} : memref<1x8x256xbf16, #tpu.memory_space<vmem>>, vector<1x8x256xbf16>,
    %cst_58 = arith.constant dense<0.000000e+00> : vector<8xf32>
    %71 = vector.multi_reduction <add>, %66, %cst_58 [1] : vector<8x256xf32> to vector<8xf32>
    %72 = vector.shape_cast %71 : vector<8xf32> to vector<8x1xf32>
    %cst_59 = arith.constant 3.906250e-03 : f32
    %73 = vector.broadcast %cst_59 : f32 to vector<8x1xf32>
    %74 = arith.mulf %72, %73 : vector<8x1xf32>
    %75 = vector.broadcast %74 : vector<8x1xf32> to vector<8x256xf32>
    %76 = arith.subf %66, %75 : vector<8x256xf32>
    %c0_60 = arith.constant 0 : index
    %c0_61 = arith.constant 0 : index
    %c0_62 = arith.constant 0 : index
    %77 = vector.load %arg6[%c0_60, %c0_61, %c0_62] : memref<1x8x1xf32, #tpu.memory_space<vmem>>, vector<1x8x1xf32>
    %78 = vector.shape_cast %77 : vector<1x8x1xf32> to vector<8x1xf32>
    %79 = vector.shape_cast %72 : vector<8x1xf32> to vector<1x8x1xf32>
    tpu.vector_store %arg6[%c0_60, %c0_61, %c0_62], %79 {strides = array<i32>} : memref<1x8x1xf32, #tpu.memory_space<vmem>>, vector<1x8x1xf32>,
    %80 = arith.mulf %76, %76 : vector<8x256xf32>
    %cst_63 = arith.constant dense<0.000000e+00> : vector<8xf32>
    %81 = vector.multi_reduction <add>, %80, %cst_63 [1] : vector<8x256xf32> to vector<8xf32>
    %82 = vector.shape_cast %81 : vector<8xf32> to vector<8x1xf32>
    %c0_64 = arith.constant 0 : index
    %c0_65 = arith.constant 0 : index
    %c0_66 = arith.constant 0 : index
    %83 = vector.load %arg7[%c0_64, %c0_65, %c0_66] : memref<1x8x1xf32, #tpu.memory_space<vmem>>, vector<1x8x1xf32>
    %84 = vector.shape_cast %83 : vector<1x8x1xf32> to vector<8x1xf32>
    %85 = vector.shape_cast %82 : vector<8x1xf32> to vector<1x8x1xf32>
    tpu.vector_store %arg7[%c0_64, %c0_65, %c0_66], %85 {strides = array<i32>} : memref<1x8x1xf32, #tpu.memory_space<vmem>>, vector<1x8x1xf32>,
    return
  }
  func.func @transform_0(%arg0: i32) -> (i32, i32, i32) {
    %c0_i32 = arith.constant 0 : i32
    %c0_i32_0 = arith.constant 0 : i32
    %c0_i32_1 = arith.constant 0 : i32
    return %arg0, %c0_i32, %c0_i32_0 : i32, i32, i32
  }
  func.func @transform_1(%arg0: i32) -> (i32, i32, i32) {
    %c0_i32 = arith.constant 0 : i32
    %c0_i32_0 = arith.constant 0 : i32
    %c0_i32_1 = arith.constant 0 : i32
    %c0_i32_2 = arith.constant 0 : i32
    return %c0_i32, %c0_i32_0, %c0_i32_1 : i32, i32, i32
  }
  func.func @transform_2(%arg0: i32) -> (i32, i32) {
    %c0_i32 = arith.constant 0 : i32
    %c0_i32_0 = arith.constant 0 : i32
    %c0_i32_1 = arith.constant 0 : i32
    return %c0_i32, %c0_i32_0 : i32, i32
  }
  func.func @transform_3(%arg0: i32) -> (i32, i32) {
    %c0_i32 = arith.constant 0 : i32
    %c0_i32_0 = arith.constant 0 : i32
    %c0_i32_1 = arith.constant 0 : i32
    return %c0_i32, %c0_i32_0 : i32, i32
  }
  func.func @transform_4(%arg0: i32) -> (i32, i32, i32) {
    %c0_i32 = arith.constant 0 : i32
    %c0_i32_0 = arith.constant 0 : i32
    %c0_i32_1 = arith.constant 0 : i32
    return %arg0, %c0_i32, %c0_i32_0 : i32, i32, i32
  }
  func.func @transform_5(%arg0: i32) -> (i32, i32, i32) {
    %c0_i32 = arith.constant 0 : i32
    %c0_i32_0 = arith.constant 0 : i32
    %c0_i32_1 = arith.constant 0 : i32
    return %arg0, %c0_i32, %c0_i32_0 : i32, i32, i32
  }
  func.func @transform_6(%arg0: i32) -> (i32, i32, i32) {
    %c0_i32 = arith.constant 0 : i32
    %c0_i32_0 = arith.constant 0 : i32
    %c0_i32_1 = arith.constant 0 : i32
    return %arg0, %c0_i32, %c0_i32_0 : i32, i32, i32
  }
}

</mosaic_0001>

<bundles_post_ra>
// kernel: tpu_custom_call.1
= control target key start
LH: loop header
LB: loop body
LE: loop exit
PB: predicated region body
PF: predicated region fallthrough
CT: control target
= control target key end

     0   :  { %12 = vsyncpa [#allocation3], 0  ;;  %s1564_s0 = inlined_call_operand.vmem [shape: bf16[2,4,290], index: 0, kind: input, shape index: {}]   ;;  %s1565_s1 = inlined_call_operand.vmem [shape: bf16[9,8,4], index: 1, kind: input, shape index: {}]   ;;  %s1566_s2 = inlined_call_operand.vmem [shape: f32[1,256], index: 2, kind: input, shape index: {}]   ;;  %s1567_s3 = inlined_call_operand.vmem [shape: f32[1,256], index: 3, kind: input, shape index: {}]   ;;  %s1568_s4 = inlined_call_operand.hbm [shape: bf16[2,8,256], index: 4, kind: output, shape index: {0}]   ;;  %s1569_s5 = inlined_call_operand.vmem [shape: f32[2,8,1], index: 5, kind: output, shape index: {1}]   ;;  %s1570_s6 = inlined_call_operand.vmem [shape: f32[2,8,1], index: 6, kind: output, shape index: {2}]  }
   0x1   :  { %14 = vsyncpa [#allocation3 + $0x1], 0  ;;  %s1353_s21 = smov 0   ;;  %s1355_s22 = smov 0  }
   0x2   :  { %s1357_s23 = smov 0   ;;  %s1359_s24 = smov 0  }
   0x3 LB: > { %s1374_s25 = sadd.s32 4294967295, %s1305_s24   ;;  %s1130_s26 = sadd.s32 4294967294, %s1305_s24   ;;  %s1305_s24 = sphi %s1359_s24, %s1576_s24   ;;  %s1301_s23 = sphi %s1357_s23, %s1575_s23   ;;  %s1297_s22 = sphi %s1355_s22, %s1574_s22   ;;  %s1293_s21 = sphi %s1353_s21, %s1573_s21  }
   0x4   : > { %s1378_s27 = sadd.s32 1, %s1305_s24   ;;  %s116_s28 = sadd.s32 1, %s1301_s23 }
   0x5   : > { %s113_s29 = ssub.s32 %s1305_s24, %s1378_s27  ;;  %p126_p0 = scmp.ne.s32.totalorder %s1301_s23, %s1297_s22 }
   0x6   : > { %p114_p1 = scmp.eq.s32.totalorder %s113_s29, 0  ;;  %p127_p2 = scmp.eq.s32.totalorder %s1374_s25, 1 }
   0x7   : > { %p132_p3 = scmp.ne.s32.totalorder %s1297_s22, %s1293_s21  ;;  %p133_p4 = scmp.eq.s32.totalorder %s1130_s26, 1 }
   0x8   : > { %s1389_s30 = scalar_select %p114_p1, %s1301_s23, %s116_s28  }
   0x9   : > { %p1391_p5 = por %p127_p2, %p126_p0  ;;  %p1395_p6 = por %p133_p4, %p132_p3 }
   0xa   : > { %p1133_p7 = scmp.ge.s32.totalorder %s1305_s24, 1  ;;  %p220_p8 = scmp.lt.s32.totalorder %s1305_s24, 3 }
   0xc   : > { %p221_p9 = pnand %p1133_p7, %p220_p8 }
   0xd   : > { %p258_p10 = scmp.lt.s32.totalorder (!%p221_p9), %s1374_s25, 1  ;;  %v282_v0 = vlaneseq (!%p221_p9)  ;;  %v1307_v1 = vmov (!%p221_p9), 1983009808   ;;  %v1308_v3 = vmov (!%p221_p9), 0   ;;  %s1309_s14 = smov (!%p221_p9), 96   ;;  %vm307_vm0 = vcmask (!%p221_p9), 1041408  }
   0xe   : > { %224 = sbr.rel (%p221_p9) target bundleno = 706 (0x2c2), region = 36  ;;  %v280_v2 = vunpack.c.l.s4 (!%p221_p9), %v1307_v1  ;;  %405 = vmatprep.mubr.bf16.mxu0 (!%p221_p9), %v1308_v3  ;;  %346 = vmatprep.mubr.bf16.mxu1 (!%p221_p9), %v1308_v3  ;;  %s1310_s15 = smov (!%p221_p9), 112   ;;  %v273_v21 = vld [vmem:[%s1565_s1] sm:$0xf] (!%p221_p9)  ;;  %vm303_vm1 = vcmask (!%p221_p9), 31744   ;;  %vm440_vm2 = vcmask (!%p221_p9), 785408  }
   0xf   : > { %v1407_v4 = vshrl.u32 (!%p221_p9), %v282_v0, 7  ;;  %s1311_s16 = smov (!%p221_p9), 110   ;;  %s1312_s19 = smov (!%p221_p9), 111   ;;  %vm300_vm3 = vcmask (!%p221_p9), 916480   ;;  %v1144_v50 = vld [vmem:[%s1565_s1 + $0x18] sm:$0xf] (!%p221_p9) }
  0x10   : > { %v281_v5 = vunpack.c.0.s8 (!%p221_p9), %v280_v2  ;;  %s1313_s20 = smov (!%p221_p9), 126   ;;  %s1314_s26 = smov (!%p221_p9), 127   ;;  %vm762_vm4 = vcmask (!%p221_p9), 900096   ;;  %v1138_v57 = vld [vmem:[%s1565_s1 + $0xc] sm:$0xf] (!%p221_p9)  ;;  %vm539_vm5 = vcmask (!%p221_p9), 908288  }
  0x11   : > { %s1315_s28 = smov (!%p221_p9), 95   ;;  %s1316_s29 = smov (!%p221_p9), 94   ;;  %v1157_v62 = vld [vmem:[%s1565_s1 + $0x14] sm:$0xf] (!%p221_p9)  ;;  %vm821_vm6 = vcmask (!%p221_p9), 1031168   ;;  %vm598_vm7 = vcmask (!%p221_p9), 1039360  }
  0x12   : > { %v1411_v6 = vsub.s32 (!%p221_p9), %v281_v5, %v1407_v4  ;;  %vm677_vm8 = vcmask (!%p221_p9), 777216   ;;  %vm900_vm9 = vcmask (!%p221_p9), 769024   ;;  %vm986_vm10 = vcmask (!%p221_p9), 7168  }
  0x15   : > { %s1405_s9 = scalar_select %p258_p10, %s1374_s25, 1 }
  0x17   : > { %s1187_s10 = smul.u32 6, %s1405_s9 }
  0x19   : > { %s1416_s13 = scalar_lea.vmem %s1564_s0, %s1187_s10 }
  0x1a   : > { %v414_v7 = vld [vmem:[%s1416_s13] sm:$0x3f] }
  0x1b   : > { %v274_v8 = vld [vmem:[%s1416_s13] sm:$0x3f]  ;;  %v425_v10 = vrot.slane %v414_v7, %v1411_v6  ;;  %v418_v11 = vcombine.high %v414_v7, %v414_v7 }
  0x1c   : > { %v734_v9 = vld [vmem:[%s1416_s13] sm:$0x3f]  ;;  %v285_v12 = vrot.slane %v274_v8, %v1411_v6  ;;  %v278_v13 = vcombine.high %v274_v8, %v274_v8 }
  0x1d   : > { %434 = vrot.lane.b32.xlu0 %v425_v10, %s1309_s14  ;;  %v747_v14 = vrot.slane %v734_v9, %v1411_v6  ;;  %v432_v15 = vrot.slane %v418_v11, %v1411_v6  ;;  %v1141_v16 = vld.sshfl [vmem:[%s1416_s13] sm:$0x33 pattern:$0x76325410]  ;;  %v433_v19 = vcombine.high %v425_v10, %v425_v10  ;;  %v740_v24 = vcombine.high %v734_v9, %v734_v9 }
  0x1e   : > { %294 = vrot.lane.b32.xlu1 %v285_v12, %s1310_s15  ;;  %v363_v17 = vcombine.high %v1141_v16, %v1141_v16  ;;  %v368_v18 = vsel %vm307_vm0, %v1141_v16, 0  ;;  %v292_v20 = vrot.slane %v278_v13, %v1411_v6  ;;  %v293_v22 = vcombine.high %v285_v12, %v285_v12  ;;  %v511_v25 = vld [vmem:[%s1416_s13] sm:$0x3f] }
  0x1f   : > { %v755_v23 = vcombine.high %v747_v14, %v747_v14  ;;  %v754_v26 = vrot.slane %v740_v24, %v1411_v6  ;;  %v524_v27 = vrot.slane %v511_v25, %v1411_v6  ;;  %v517_v28 = vcombine.high %v511_v25, %v511_v25  ;;  %v651_v31 = vld [vmem:[%s1416_s13] sm:$0x3f] }
  0x20   : > { %1142 = vmatprep.subr.msk.bf16.mxu0 %vm307_vm0, %v363_v17  ;;  %v662_v32 = vrot.slane %v651_v31, %v1411_v6  ;;  %v655_v34 = vcombine.high %v651_v31, %v651_v31  ;;  %v874_v35 = vld [vmem:[%s1416_s13] sm:$0x3f] }
  0x21   : > { %756 = vrot.lane.b32.xlu0 %v747_v14, %s1311_s16  ;;  %374 = vmatpush1.bf16.msra.mxu0 %v368_v18  ;;  %v532_v29 = vcombine.high %v524_v27, %v524_v27  ;;  %v531_v30 = vrot.slane %v517_v28, %v1411_v6  ;;  %v885_v37 = vrot.slane %v874_v35, %v1411_v6  ;;  %v1153_v28 = vld [vmem:[%s1565_s1 + $0x1c] sm:$0xf] }
  0x22   : > { %438 = vrot.lane.b32.xlu1 %v432_v15, %s1309_s14  ;;  %v670_v33 = vcombine.high %v662_v32, %v662_v32  ;;  %v669_v36 = vrot.slane %v655_v34, %v1411_v6  ;;  %v878_v38 = vcombine.high %v874_v35, %v874_v35 }
  0x23   : > { %v893_v39 = vcombine.high %v885_v37, %v885_v37 }
  0x24   : > { %1143 = vmatmul.mubr.msk.bf16.vlgmr.msra.gmra.mrb[0].mxu0 %vm303_vm1, %v273_v21  ;;  %v892_v40 = vrot.slane %v878_v38, %v1411_v6  ;;  %v1148_v6 = vld [vmem:[%s1565_s1 + $0x10] sm:$0xf] }
  0x25   : > { %436 = vrot.lane.b32.xlu0 %v433_v19, %s1309_s14  ;;  %484 = vmatprep.mubr.bf16.mxu0 %v1308_v3 }
  0x26   : > { %298 = vrot.lane.b32.xlu1 %v292_v20, %s1310_s15  ;;  %v1147_v20 = vld [vmem:[%s1565_s1 + $0x4] sm:$0xf] }
  0x29   : > { %296 = vrot.lane.b32.xlu0 %v293_v22, %s1310_s15 }
  0x2a   : > { %758 = vrot.lane.b32.xlu1 %v755_v23, %s1311_s16 }
  0x2d   : > { %760 = vrot.lane.b32.xlu0 %v754_v26, %s1311_s16  ;;  %s243_s16 = sand.u32 1, %s1297_s22  }
  0x2e   : > { %533 = vrot.lane.b32.xlu1 %v524_v27, %s1312_s19  ;;  %s1134_s17 = sshll.u32 %s243_s16, 3  ;;  %s995_s14 = scalar_lea.sflag [#allocation3], %s243_s16 }
  0x2f   : > { %s245_s18 = scalar_lea.vmem [#allocation2], %s1134_s17  ;;  %s1317_s17 = smov [#allocation2]  }
  0x30   : > { %s1017_s10 = sshll.u32 %s245_s18, 4  ;;  %s1018_s10 = int_to_ptr.vmem [resolvable:$true] %s1017_s10 }
  0x31   : > { %535 = vrot.lane.b32.xlu0 %v532_v29, %s1312_s19  ;;  %s1243_s15 = scalar_lea.vmem %s1018_s10, 128 }
  0x32   : > { %537 = vrot.lane.b32.xlu1 %v531_v30, %s1312_s19  ;;  %s1136_s19 = sshll.u32 %s1405_s9, 3  ;;  %p1244_p11 = scmp.ne.s32.totalorder %s1018_s10, %s1243_s15 }
  0x34   : > { %p1245_p12 = pnand %p1244_p11, %p1391_p5 }
  0x35   : > { %815 = vrot.lane.b32.xlu0 %v747_v14, %s1313_s20  ;;  %v1156_v14 = vld [vmem:[%s1565_s1 + $0x8] sm:$0xf] }
  0x36   : > { %817 = vrot.lane.b32.xlu1 %v755_v23, %s1313_s20  ;;  %p1246_p13 = pneg %p1245_p12 }
  0x39   : > { %819 = vrot.lane.b32.xlu0 %v754_v26, %s1313_s20  ;;  %s1247_s20 = sshll.u32 %s1317_s17, 4  ;;  %s1248_s20 = int_to_ptr.vmem [resolvable:$false] %s1247_s20 }
  0x3a   : > { %592 = vrot.lane.b32.xlu1 %v524_v27, %s1314_s26  ;;  %p1250_p0 = scmp.lt.s32.totalorder %s1018_s10, %s1248_s20 }
  0x3d   : > { %594 = vrot.lane.b32.xlu0 %v532_v29, %s1314_s26 }
  0x3e   : > { %596 = vrot.lane.b32.xlu1 %v531_v30, %s1314_s26  ;;  %s1249_s26 = scalar_lea.vmem %s1248_s20, 256 }
  0x3f   : > { %p1251_p1 = scmp.lt.s32.totalorder %s1249_s26, %s1243_s15 }
  0x41   : > { %671 = vrot.lane.b32.xlu0 %v662_v32, %s1315_s28  ;;  %p1252_p2 = por %p1251_p1, %p1250_p0 }
  0x42   : > { %673 = vrot.lane.b32.xlu1 %v670_v33, %s1315_s28 }
  0x43   : > { %p1253_p3 = pnand %p1252_p2, %p1246_p13 }
  0x45   : > { %675 = vrot.lane.b32.xlu0 %v669_v36, %s1315_s28  ;;  %s266_s28 = scalar_lea.vmem %s1569_s5, %s1136_s19 }
  0x46   : > { %894 = vrot.lane.b32.xlu1 %v885_v37, %s1316_s29 }
  0x49   : > { %896 = vrot.lane.b32.xlu0 %v893_v39, %s1316_s29 }
  0x4a   : > { %898 = vrot.lane.b32.xlu1 %v892_v40, %s1316_s29  ;;  %s1172_s29 = sshll.u32 %s1374_s25, 7 }
  0x4b   : > { %s1520_s13 = scalar_lea.hbm %s1568_s4, %s1172_s29 }
  0x8f   : > { %v435_v41 = vpop.permute.xlu0 %434 }
  0x90   : > { %v295_v42 = vpop.permute.xlu1 %294 }
  0x93   : > { %v757_v43 = vpop.permute.xlu0 %756 }
  0x94   : > { %v439_v44 = vpop.permute.xlu1 %438 }
  0x97   : > { %v437_v45 = vpop.permute.xlu0 %436 }
  0x98   : > { %v299_v46 = vpop.permute.xlu1 %298  ;;  %v441_v47 = vsel %vm440_vm2, %v435_v41, %v437_v45  ;;  %v442_v48 = vsel %vm440_vm2, %v437_v45, %v439_v44 }
  0x99   : > { %v447_v49 = vsel %vm307_vm0, %v441_v47, 0  ;;  %1145 = vmatprep.subr.msk.bf16.mxu0 %vm307_vm0, %v442_v48 }
  0x9a   : > { %453 = vmatpush1.bf16.msra.mxu0 %v447_v49  ;;  %v499_v49 = vsub.s32 0, %v1407_v4 }
  0x9b   : > { %v297_v51 = vpop.permute.xlu0 %296 }
  0x9c   : > { %v759_v52 = vpop.permute.xlu1 %758  ;;  %v302_v53 = vsel %vm300_vm3, %v297_v51, %v299_v46  ;;  %v301_v54 = vsel %vm300_vm3, %v295_v42, %v297_v51 }
  0x9d   : > { %1139 = vmatprep.subr.msk.bf16.mxu1 %vm307_vm0, %v302_v53  ;;  %1146 = vmatmul.mubr.msk.bf16.vlgmr.msra.gmra.mrb[0].mxu0 %vm303_vm1, %v1144_v50  ;;  %v309_v55 = vsel %vm307_vm0, %v301_v54, 0  ;;  %v763_v56 = vsel %vm762_vm4, %v757_v43, %v759_v52  ;;  %v503_v53 = vsub.s32 1, %v1407_v4 }
  0x9e   : > { %315 = vmatpush1.bf16.msra.mxu1 %v309_v55  ;;  %806 = vmatprep.mubr.bf16.mxu0 %v1308_v3  ;;  %v769_v61 = vsel %vm307_vm0, %v763_v56, 0 }
  0x9f   : > { %v761_v58 = vpop.permute.xlu0 %760 }
  0xa0   : > { %v534_v59 = vpop.permute.xlu1 %533  ;;  %v764_v60 = vsel %vm762_vm4, %v759_v52, %v761_v58  ;;  %v495_v52 = vld [vmem:[%s1566_s2] sm:$0x3] }
  0xa1   : > { %1140 = vmatmul.mubr.msk.bf16.vlgmr.msra.gmra.mrb[0].mxu1 %vm303_vm1, %v1138_v57  ;;  %1158 = vmatprep.subr.msk.bf16.mxu0 %vm307_vm0, %v764_v60  ;;  %v500_v57 = vrot.slane %v495_v52, %v499_v49  ;;  %v504_v58 = vrot.slane %v495_v52, %v503_v53 }
  0xa2   : > { %775 = vmatpush1.bf16.msra.mxu0 %v769_v61  ;;  %583 = vmatprep.mubr.bf16.mxu1 %v1308_v3 }
  0xa3   : > { %v536_v63 = vpop.permute.xlu0 %535 }
  0xa4   : > { %v538_v0 = vpop.permute.xlu1 %537  ;;  %v540_v1 = vsel %vm539_vm5, %v534_v59, %v536_v63  ;;  %v955_v59 = vld [vmem:[%s1567_s3] sm:$0x3] }
  0xa5   : > { %v541_v2 = vsel %vm539_vm5, %v536_v63, %v538_v0  ;;  %v546_v5 = vsel %vm307_vm0, %v540_v1, 0  ;;  %1159 = vmatmul.mubr.msk.bf16.vlgmr.msra.gmra.mrb[4].mxu0 %vm303_vm1, %v1157_v62  ;;  %v960_v0 = vrot.slane %v955_v59, %v499_v49 }
  0xa6   : > { %1149 = vmatprep.subr.msk.bf16.mxu1 %vm307_vm0, %v541_v2  ;;  %865 = vmatprep.mubr.bf16.mxu0 %v1308_v3 }
  0xa7   : > { %552 = vmatpush1.bf16.msra.mxu1 %v546_v5  ;;  %v816_v7 = vpop.permute.xlu0 %815  ;;  %v964_v5 = vrot.slane %v955_v59, %v503_v53 }
  0xa8   : > { %v818_v8 = vpop.permute.xlu1 %817 }
  0xa9   : > { %v822_v9 = vsel %vm821_vm6, %v816_v7, %v818_v8 }
  0xaa   : > { %1150 = vmatmul.mubr.msk.bf16.vlgmr.msra.gmra.mrb[4].mxu1 %vm303_vm1, %v1148_v6  ;;  %v828_v13 = vsel %vm307_vm0, %v822_v9, 0 }
  0xab   : > { %642 = vmatprep.mubr.bf16.mxu1 %v1308_v3  ;;  %v820_v10 = vpop.permute.xlu0 %819 }
  0xac   : > { %v593_v11 = vpop.permute.xlu1 %592  ;;  %v823_v12 = vsel %vm821_vm6, %v818_v8, %v820_v10 }
  0xad   : > { %1160 = vmatprep.subr.msk.bf16.mxu0 %vm307_vm0, %v823_v12 }
  0xae   : > { %834 = vmatpush1.bf16.msra.mxu0 %v828_v13 }
  0xaf   : > { %v595_v15 = vpop.permute.xlu0 %594 }
  0xb0   : > { %v597_v16 = vpop.permute.xlu1 %596  ;;  %v599_v17 = vsel %vm598_vm7, %v593_v11, %v595_v15 }
  0xb1   : > { %v600_v18 = vsel %vm598_vm7, %v595_v15, %v597_v16  ;;  %v605_v19 = vsel %vm307_vm0, %v599_v17, 0  ;;  %1161 = vmatmul.mubr.msk.bf16.vlgmr.msra.gmra.mrb[4].mxu0 %vm303_vm1, %v1156_v14 }
  0xb2   : > { %1151 = vmatprep.subr.msk.bf16.mxu1 %vm307_vm0, %v600_v18  ;;  %944 = vmatprep.mubr.bf16.mxu0 %v1308_v3 }
  0xb3   : > { %611 = vmatpush1.bf16.msra.mxu1 %v605_v19  ;;  %v672_v21 = vpop.permute.xlu0 %671 }
  0xb4   : > { %v674_v22 = vpop.permute.xlu1 %673 }
  0xb5   : > { %v678_v23 = vsel %vm677_vm8, %v672_v21, %v674_v22 }
  0xb6   : > { %1152 = vmatmul.mubr.msk.bf16.vlgmr.msra.gmra.mrb[8].mxu1 %vm303_vm1, %v1147_v20  ;;  %v684_v27 = vsel %vm307_vm0, %v678_v23, 0 }
  0xb7   : > { %721 = vmatprep.mubr.bf16.mxu1 %v1308_v3  ;;  %v676_v24 = vpop.permute.xlu0 %675  ;;  %v1162_v3 = vld [vmem:[%s1565_s1 + $0x20] sm:$0xf] }
  0xb8   : > { %v895_v25 = vpop.permute.xlu1 %894  ;;  %v679_v26 = vsel %vm677_vm8, %v674_v22, %v676_v24 }
  0xb9   : > { %1154 = vmatprep.subr.msk.bf16.mxu1 %vm307_vm0, %v679_v26 }
  0xba   : > { %690 = vmatpush1.bf16.msra.mxu1 %v684_v27 }
  0xbb   : > { %v897_v29 = vpop.permute.xlu0 %896 }
  0xbc   : > { %v899_v30 = vpop.permute.xlu1 %898  ;;  %v901_v31 = vsel %vm900_vm9, %v895_v25, %v897_v29 }
  0xbd   : > { %v902_v32 = vsel %vm900_vm9, %v897_v29, %v899_v30  ;;  %v907_v33 = vsel %vm307_vm0, %v901_v31, 0 }
  0xbe   : > { %1155 = vmatmul.mubr.msk.bf16.vlgmr.msra.gmra.mrb[12].mxu1 %vm303_vm1, %v1153_v28  ;;  %1163 = vmatprep.subr.msk.bf16.mxu0 %vm307_vm0, %v902_v32 }
  0xbf   : > { %913 = vmatpush1.bf16.msra.mxu0 %v907_v33 }
  0xc2   : > { %1164 = vmatmul.mubr.msk.bf16.vlgmr.msra.gmra.mrb[4].mxu0 %vm303_vm1, %v1162_v3 }
 0x170   : > { %v486_v34 = vpop.f32.mrb[0].mxu0 }
 0x171   : > { %v488_v35 = vpop.f32.mrb[1].mxu0 }
 0x172   : > { %v490_v36 = vpop.f32.mrb[2].mxu0 }
 0x173   : > { %v491_v37 = vpop.f32.mrb[3].mxu0 }
 0x174   : > { %v348_v38 = vpop.f32.mrb[0].mxu1 }
 0x175   : > { %v1173_v39 = vadd.f32 %v486_v34, %v348_v38  ;;  %v350_v40 = vpop.f32.mrb[1].mxu1 }
 0x176   : > { %v1174_v41 = vadd.f32 %v488_v35, %v350_v40  ;;  %v352_v42 = vpop.f32.mrb[2].mxu1 }
 0x177   : > { %v353_v43 = vpop.f32.mrb[3].mxu1  ;;  %v507_v61 = vmul.f32 %v1173_v39, %v500_v57 }
 0x178   : > { %v508_v1 = vmul.f32 %v1174_v41, %v504_v58 }
 0x17d   : > { %v585_v44 = vpop.f32.mrb[4].mxu1 }
 0x17e   : > { %v587_v45 = vpop.f32.mrb[5].mxu1 }
 0x17f   : > { %v589_v46 = vpop.f32.mrb[6].mxu1 }
 0x180   : > { %v590_v47 = vpop.f32.mrb[7].mxu1 }
 0x189   : > { %v644_v48 = vpop.f32.mrb[8].mxu1 }
 0x18a   : > { %v645_v50 = vadd.f32 %v644_v48, %v585_v44  ;;  %v646_v51 = vpop.f32.mrb[9].mxu1 }
 0x18b   : > { %v647_v54 = vadd.f32 %v646_v51, %v587_v45  ;;  %v648_v55 = vpop.f32.mrb[10].mxu1 }
 0x18c   : > { %v649_v56 = vpop.f32.mrb[11].mxu1 }
 0x191   : > { %v723_v60 = vpop.f32.mrb[12].mxu1 }
 0x192   : > { %v730_v62 = vadd.f32 %v723_v60, %v645_v50  ;;  %v725_v63 = vpop.f32.mrb[13].mxu1 }
 0x193   : > { %v731_v2 = vadd.f32 %v725_v63, %v647_v54  ;;  %v727_v4 = vpop.f32.mrb[14].mxu1 }
 0x194   : > { %v732_v6 = vadd.f32 %v730_v62, %v507_v61  ;;  %v728_v7 = vpop.f32.mrb[15].mxu1 }
 0x195   : > { %v733_v8 = vadd.f32 %v731_v2, %v508_v1  ;;  %v946_v9 = vpop.f32.mrb[4].mxu0 }
 0x196   : > { %v967_v10 = vmul.f32 %v960_v0, %v946_v9  ;;  %v948_v11 = vpop.f32.mrb[5].mxu0 }
 0x197   : > { %v968_v12 = vmul.f32 %v964_v5, %v948_v11  ;;  %v950_v13 = vpop.f32.mrb[6].mxu0 }
 0x198   : > { %v969_v14 = vadd.f32 %v967_v10, %v732_v6  ;;  %v951_v15 = vpop.f32.mrb[7].mxu0 }
 0x199   : > { %v970_v16 = vadd.f32 %v968_v12, %v733_v8 }
 0x19b   : > { %v980_v17 = vadd.f32 %v970_v16, %v969_v14  ;;  %v1171_v18 = vpack.c.bf16 %v970_v16, %v969_v14 }
 0x19d   : > { %981 = vadd.xlane.f32.xlu0 %v980_v17  ;;  %979 = vst [vmem:[%s245_s18] sm:$0xff] %v1171_v18 }
 0x22a   : > { %v982_v19 = vpop.xlane.xlu0 %981 }
 0x22b   : > { %v983_v20 = vmul.f32 0.00390625, %v982_v19  ;;  %987 = vst.msk [vmem:[%s266_s28] sm:$0xff] %vm986_vm10, %v982_v19 }
 0x22d   : > { %v984_v21 = vsub.f32 %v969_v14, %v983_v20  ;;  %v985_v22 = vsub.f32 %v970_v16, %v983_v20 }
 0x22f   : > { %v988_v23 = vmul.f32 %v984_v21, %v984_v21  ;;  %v989_v24 = vmul.f32 %v985_v22, %v985_v22 }
 0x231   : > { %v990_v25 = vadd.f32 %v989_v24, %v988_v23 }
 0x233   : > { %991 = vadd.xlane.f32.xlu1 %v990_v25 }
 0x234   : > { %1256 = shalt.err (!%p1253_p3)
}
 0x235   : > { %s1257_s25 = scalar_lea.hbm %s1520_s13, 128  ;;  %s1261_s28 = scalar_lea.hbm %s1568_s4, 256 }
 0x236   : > { %p1258_p4 = scmp.ne.s32.totalorder %s1520_s13, %s1257_s25  ;;  %p1262_p9 = scmp.lt.u32.totalorder %s1520_s13, %s1568_s4 }
 0x237   : > { %p1263_p10 = scmp.lt.u32.totalorder %s1261_s28, %s1257_s25  ;;  %p1265_p12 = scmp.lt.u32.totalorder %s1257_s25, %s1520_s13 }
 0x238   : > { %p1259_p7 = pnand %p1258_p4, %p1391_p5 }
 0x239   : > { %p1264_p11 = por %p1263_p10, %p1262_p9 }
 0x23a   : > { %p1260_p8 = pneg %p1259_p7 }
 0x23b   : > { %p1266_p13 = por %p1265_p12, %p1264_p11 }
 0x23d   : > { %p1267_p0 = pnand %p1266_p13, %p1260_p8 }
 0x23f   : > { %1270 = shalt.err (!%p1267_p0)
}
 0x240   : > { %1188 = dma.vmem_to_hbm [thread:$0]  (%p1391_p5), %s1018_s10, 128, %s1520_s13, %s995_s14  }
 0x241   : > { %s270_s17 = scalar_lea.vmem %s1570_s6, %s1136_s19 }
 0x2c0   : > { %v992_v26 = vpop.xlane.xlu1 %991 }
 0x2c1   : > { %993 = vst.msk [vmem:[%s270_s17] sm:$0xff] %vm986_vm10, %v992_v26 }
 0x2c2 PF: > { %p1194_p1 = scmp.ge.s32.totalorder %s1305_s24, 2  ;;  %s1035_s20 = sand.u32 1, %s1293_s21  }
 0x2c3   : > { %s1036_s7 = scalar_lea.sflag [#allocation3], %s1035_s20 }
 0x2c4   : > { %p1191_p2 = pnand %p1194_p1, %p1395_p6 }
 0x2c6   : > { %1288 = dma.done.wait (!%p1191_p2), %s1036_s7, 128  }
 0x2c7   : > { %1290 = vsyncadd (!%p1191_p2), %s1036_s7, 4294967168  ;;  %p17_p5 = scmp.ge.s32.totalorder %s1378_s27, 4   ;;  %s1573_s21 = smov %s1297_s22 }
 0x2c8   : > { %s1574_s22 = smov %s1301_s23  ;;  %s1575_s23 = smov %s1389_s30 }
 0x2c9   : > { %s1576_s24 = smov %s1378_s27  ;;  %19 = sbr.rel (!%p17_p5) target bundleno = 3 (0x3), region = 103 }
 0x2d0   :  { %1055 = vsyncpa [#allocation3], 1 }
 0x2d1   :  { %1057 = vsyncpa [#allocation3 + $0x1], 1 }

</bundles_post_ra>
